<compile_context>
chip_gen: v6e
topology: v6e:2x2x1
jax: 0.10.0
libtpu: 0.0.40
codegen_flags: <defaults>
</compile_context>

<pallas_src>
import math

import jax
import jax.numpy as jnp
from jax.experimental import pallas as pl
from jax.experimental.pallas import tpu as pltpu


_LANE = 512        # lane-dense last dim (multiple of 128)
_TILE_ROWS = 512   # max sublane rows per tile -> 512x512 f32 = 1 MiB/tile

# 0.5 * x * (1 + tanh(u)) == x * sigmoid(2u),  u = sqrt(2/pi)*(x + 0.044715*x^3)
#   => z = 2u = x * (K1 + K2 * x * x)
_K1 = 2.0 * math.sqrt(2.0 / math.pi)
_K2 = _K1 * 0.044715


def _gelu_kernel(x_ref, o_ref):
    # Compute in f32 regardless of storage dtype (v5e VPU/EUP lack bf16);
    # cast back on store so HBM traffic stays in the input dtype.
    x = x_ref[...].astype(jnp.float32)
    z = x * (_K1 + _K2 * x * x)
    o_ref[...] = (x * jax.nn.sigmoid(z)).astype(o_ref.dtype)


def _round_up(a: int, b: int) -> int:
    return -(-a // b) * b


def gelu_pallas(x: jax.Array) -> jax.Array:
    orig_shape = x.shape
    dtype = x.dtype
    n = x.size

    # Flatten to a lane-dense (rows, _LANE) slab; pad with zeros (GELU(0)=0,
    # and the pad region is sliced off afterwards anyway).
    rows_needed = max(1, -(-n // _LANE))
    tile_r = min(_TILE_ROWS, _round_up(rows_needed, 8))   # sublane multiple of 8
    rows = _round_up(rows_needed, tile_r)                  # grid divides evenly
    padded_n = rows * _LANE

    flat = x.reshape(-1)
    if padded_n != n:
        flat = jnp.pad(flat, (0, padded_n - n))
    x2d = flat.reshape(rows, _LANE)

    itemsize = jnp.dtype(dtype).itemsize
    cost = pl.CostEstimate(
        flops=6 * padded_n,
        transcendentals=padded_n,
        bytes_accessed=2 * padded_n * itemsize,
    )

    out = pl.pallas_call(
        _gelu_kernel,
        out_shape=jax.ShapeDtypeStruct((rows, _LANE), dtype),
        grid=(rows // tile_r,),
        in_specs=[pl.BlockSpec((tile_r, _LANE), lambda i: (i, 0))],
        out_specs=pl.BlockSpec((tile_r, _LANE), lambda i: (i, 0)),
        compiler_params=pltpu.CompilerParams(
            dimension_semantics=("parallel",),
        ),
        cost_estimate=cost,
    )(x2d)

    return out.reshape(-1)[:n].reshape(orig_shape)


def gelu_reference(x: jax.Array) -> jax.Array:
    c = jnp.sqrt(jnp.asarray(2.0 / math.pi, dtype=x.dtype))
    return 0.5 * x * (1.0 + jnp.tanh(c * (x + 0.044715 * x * x * x)))


if __name__ == "__main__":
    key = jax.random.PRNGKey(0)
    # GELU is used inside the transformer FeedForward on (batch, seq, hidden).
    batch, seq, hidden = 2, 8, 32
    x = jax.random.normal(key, (batch, seq, hidden), dtype=jnp.float32)

    y = gelu_pallas(x)
    jax.block_until_ready(y)

    y_ref = gelu_reference(x)
    assert y.shape == x.shape and y.dtype == x.dtype
    assert jnp.allclose(y, y_ref, atol=1e-5, rtol=1e-5), "mismatch vs reference"

    print("KERNEL_OK")
</pallas_src>

<mosaic_0001>
module attributes {stable_mosaic.version = 11 : i64} {
  func.func @_gelu_kernel(%arg0: i32, %arg1: memref<8x512xf32, #tpu.memory_space<vmem>>, %arg2: memref<8x512xf32, #tpu.memory_space<vmem>>) attributes {dimension_semantics = [#tpu.dimension_semantics<parallel>], iteration_bounds = array<i64: 1>, scalar_prefetch = 0 : i64, scratch_operands = 0 : i64, tpu.core_type = #tpu.core_type<tc>, window_params = [{transform_indices = @transform_0, window_bounds = array<i64: 8, 512>}, {transform_indices = @transform_1, window_bounds = array<i64: 8, 512>}]} {
    %c0 = arith.constant 0 : index
    %c0_0 = arith.constant 0 : index
    %0 = vector.load %arg1[%c0, %c0_0] : memref<8x512xf32, #tpu.memory_space<vmem>>, vector<8x512xf32>
    %cst = arith.constant 0.0713548139 : f32
    %1 = vector.broadcast %cst : f32 to vector<8x512xf32>
    %2 = arith.mulf %1, %0 : vector<8x512xf32>
    %3 = arith.mulf %2, %0 : vector<8x512xf32>
    %cst_1 = arith.constant 1.59576917 : f32
    %4 = vector.broadcast %cst_1 : f32 to vector<8x512xf32>
    %5 = arith.addf %4, %3 : vector<8x512xf32>
    %6 = arith.mulf %0, %5 : vector<8x512xf32>
    %7 = arith.negf %6 : vector<8x512xf32>
    %8 = math.exp %7 : vector<8x512xf32>
    %cst_2 = arith.constant 1.000000e+00 : f32
    %9 = vector.broadcast %cst_2 : f32 to vector<8x512xf32>
    %10 = arith.addf %9, %8 : vector<8x512xf32>
    %11 = arith.divf %9, %10 : vector<8x512xf32>
    %12 = arith.mulf %0, %11 : vector<8x512xf32>
    %c0_3 = arith.constant 0 : index
    %c0_4 = arith.constant 0 : index
    %13 = vector.load %arg2[%c0_3, %c0_4] : memref<8x512xf32, #tpu.memory_space<vmem>>, vector<8x512xf32>
    tpu.vector_store %arg2[%c0_3, %c0_4], %12 {strides = array<i32>} : memref<8x512xf32, #tpu.memory_space<vmem>>, vector<8x512xf32>,
    return
  }
  func.func @transform_0(%arg0: i32) -> (i32, i32) {
    %c0_i32 = arith.constant 0 : i32
    %c0_i32_0 = arith.constant 0 : i32
    return %arg0, %c0_i32 : i32, i32
  }
  func.func @transform_1(%arg0: i32) -> (i32, i32) {
    %c0_i32 = arith.constant 0 : i32
    %c0_i32_0 = arith.constant 0 : i32
    return %arg0, %c0_i32 : i32, i32
  }
}

</mosaic_0001>

<bundles_post_ra>
// kernel: tpu_custom_call.1
= control target key start
LH: loop header
LB: loop body
LE: loop exit
PB: predicated region body
PF: predicated region fallthrough
CT: control target
= control target key end

     0   :  { %6 = vsyncpa [#allocation3], 0  ;;  %s172_s0 = inlined_call_operand.hbm [shape: f32[8,512], index: 0, kind: input, shape index: {}]   ;;  %s173_s1 = inlined_call_operand.hbm [shape: f32[8,512], index: 1, kind: output, shape index: {}]  }
   0x1   :  { %7 = vsyncpa [#allocation4], 0  ;;  %s154_s6 = smov [#allocation2]  }
   0x2   :  { %s14_s7 = sshll.u32 %s154_s6, 4  ;;  %s15_s7 = int_to_ptr.vmem [resolvable:$true] %s14_s7 }
   0x3   :  { %s118_s8 = scalar_lea.vmem %s15_s7, 512  ;;  %p123_p1 = scmp.lt.s32.totalorder %s15_s7, %s15_s7 }
   0x4   :  { %p119_p0 = scmp.ne.s32.totalorder %s15_s7, %s118_s8  ;;  %p124_p2 = scmp.lt.s32.totalorder %s118_s8, %s118_s8 }
   0x6   :  { %p125_p3 = por %p124_p2, %p123_p1 }
   0x8   :  { %p126_p4 = pnand %p125_p3, %p119_p0 }
   0xa   :  { %129 = shalt.err (!%p126_p4)
}
   0xb   :  { %17 = dma.hbm_to_vmem [thread:$0]  %s172_s0, 512, %s15_s7, [#allocation3]  }
   0xc   :  { %150 = dma.done.wait [#allocation3], 512  }
   0xd   :  { %151 = vsyncadd [#allocation3], 4294966784  ;;  %v21_v0 = vld [vmem:[#allocation2] sm:$0xff]  ;;  %v22_v1 = vld [vmem:[#allocation2 + $0x8] sm:$0xff]  ;;  %s155_s0 = smov [#allocation5]  }
   0xe   :  { %v23_v2 = vld [vmem:[#allocation2 + $0x10] sm:$0xff]  ;;  %v25_v3 = vmul.f32 0.071354814, %v21_v0  ;;  %v26_v4 = vmul.f32 0.071354814, %v22_v1  ;;  %v24_v6 = vld [vmem:[#allocation2 + $0x18] sm:$0xff] }
   0xf   :  { %v27_v5 = vmul.f32 0.071354814, %v23_v2  ;;  %v28_v10 = vmul.f32 0.071354814, %v24_v6  ;;  %s79_s11 = sshll.u32 %s155_s0, 4  ;;  %s80_s11 = int_to_ptr.vmem [resolvable:$true] %s79_s11 }
  0x10   :  { %v29_v7 = vmul.f32 %v25_v3, %v21_v0  ;;  %v30_v8 = vmul.f32 %v26_v4, %v22_v1  ;;  %s130_s12 = scalar_lea.vmem %s80_s11, 512  ;;  %p135_p6 = scmp.lt.s32.totalorder %s80_s11, %s80_s11 }
  0x11   :  { %v31_v9 = vmul.f32 %v27_v5, %v23_v2  ;;  %v32_v14 = vmul.f32 %v28_v10, %v24_v6  ;;  %p131_p5 = scmp.ne.s32.totalorder %s80_s11, %s130_s12  ;;  %p136_p7 = scmp.lt.s32.totalorder %s130_s12, %s130_s12 }
  0x12   :  { %v33_v11 = vadd.f32 1.5957692, %v29_v7  ;;  %v34_v12 = vadd.f32 1.5957692, %v30_v8 }
  0x13   :  { %v35_v13 = vadd.f32 1.5957692, %v31_v9  ;;  %v36_v18 = vadd.f32 1.5957692, %v32_v14  ;;  %p137_p8 = por %p136_p7, %p135_p6 }
  0x14   :  { %v37_v15 = vmul.f32 %v33_v11, %v21_v0  ;;  %v38_v16 = vmul.f32 %v34_v12, %v22_v1 }
  0x15   :  { %v39_v17 = vmul.f32 %v35_v13, %v23_v2  ;;  %v40_v22 = vmul.f32 %v36_v18, %v24_v6  ;;  %p138_p9 = pnand %p137_p8, %p131_p5 }
  0x16   :  { %v88_v19 = vmul.f32 -1.442695, %v37_v15  ;;  %v89_v20 = vmul.f32 -1.442695, %v38_v16 }
  0x17   :  { %v90_v21 = vmul.f32 -1.442695, %v39_v17  ;;  %v91_v23 = vmul.f32 -1.442695, %v40_v22 }
  0x18   :  { %94 = vpow2.f32 %v88_v19 }
  0x19   :  { %96 = vpow2.f32 %v89_v20 }
  0x1a   :  { %98 = vpow2.f32 %v90_v21 }
  0x1b   :  { %100 = vpow2.f32 %v91_v23 }
  0x25   :  { %v95_v24 = vpop.eup %94 }
  0x26   :  { %v97_v25 = vpop.eup %96  ;;  %v53_v26 = vadd.f32 1.0, %v95_v24 }
  0x27   :  { %v99_v27 = vpop.eup %98  ;;  %v54_v28 = vadd.f32 1.0, %v97_v25 }
  0x28   :  { %v101_v29 = vpop.eup %100  ;;  %102 = vrcp.f32 %v53_v26  ;;  %v55_v30 = vadd.f32 1.0, %v99_v27 }
  0x29   :  { %104 = vrcp.f32 %v54_v28  ;;  %v56_v31 = vadd.f32 1.0, %v101_v29 }
  0x2a   :  { %106 = vrcp.f32 %v55_v30 }
  0x2b   :  { %108 = vrcp.f32 %v56_v31 }
  0x35   :  { %v103_v32 = vpop.eup %102 }
  0x36   :  { %v105_v33 = vpop.eup %104  ;;  %v65_v34 = vmul.f32 %v103_v32, %v21_v0 }
  0x37   :  { %v107_v35 = vpop.eup %106  ;;  %v66_v36 = vmul.f32 %v105_v33, %v22_v1 }
  0x38   :  { %v109_v37 = vpop.eup %108  ;;  %69 = vst [vmem:[#allocation5] sm:$0xff] %v65_v34  ;;  %v67_v38 = vmul.f32 %v107_v35, %v23_v2 }
  0x39   :  { %70 = vst [vmem:[#allocation5 + $0x8] sm:$0xff] %v66_v36  ;;  %v68_v39 = vmul.f32 %v109_v37, %v24_v6 }
  0x3a   :  { %71 = vst [vmem:[#allocation5 + $0x10] sm:$0xff] %v67_v38 }
  0x3b   :  { %72 = vst [vmem:[#allocation5 + $0x18] sm:$0xff] %v68_v39 }
  0x3c   :  { %141 = shalt.err (!%p138_p9)
}
  0x3d   :  { %82 = dma.vmem_to_hbm [thread:$0]  %s80_s11, 512, %s173_s1, [#allocation4]  }
  0x3e   :  { %152 = dma.done.wait [#allocation4], 512  }
  0x3f   :  { %153 = vsyncadd [#allocation4], 4294966784 }
  0x40   :  { %86 = vsyncpa [#allocation3], 1 }
  0x41   :  { %87 = vsyncpa [#allocation4], 1 }

</bundles_post_ra>
